<compile_context>
chip_gen: v7x
topology: tpu7x:2x2x1
jax: 0.10.0
libtpu: 0.0.40
codegen_flags: <defaults>
</compile_context>

<pallas_src>
import jax
import jax.numpy as jnp
from jax.experimental import pallas as pl
from jax.experimental.pallas import tpu as pltpu

IGNORE_INDEX = 255
DICE_WEIGHT = 1.0
SMOOTH = 1e-5
SIZE_AVERAGE = True  # reduction='mean'

LANE = 128
ROW_ALIGN = 32        # block row count multiple of 32 -> valid f32/bf16/u8 tilings
MAX_BLOCK_ROWS = 512  # ~64K pixels / grid step (~0.5 MiB f32 logits per buffer)


def _round_up(x, m):
    return (x + m - 1) // m * m


def _pick_block_rows(rows):
    """Block row count (multiple of 32, <= MAX_BLOCK_ROWS) minimizing row padding."""
    rows32 = _round_up(max(rows, 1), ROW_ALIGN)
    if rows32 <= MAX_BLOCK_ROWS:
        return rows32, rows32
    best_r, best_padded = ROW_ALIGN, _round_up(rows32, ROW_ALIGN)
    for cand in range(MAX_BLOCK_ROWS, ROW_ALIGN - 1, -ROW_ALIGN):
        padded = _round_up(rows32, cand)
        if padded < best_padded or (padded == best_padded and cand > best_r):
            best_r, best_padded = cand, padded
    return best_r, best_padded


def _dice_ce_partials_kernel(logits_ref, targets_ref, part_ref):
    # logits_ref:  (1, 2, R, 128) f32/bf16 VMEM tile
    # targets_ref: (1, R, 128)    uint8 VMEM tile (class id or 255)
    # part_ref:    (1, 1, 5, 8, 128) f32 per-block partial sums
    x0 = logits_ref[0, 0].astype(jnp.float32)          # (R, 128)
    x1 = logits_ref[0, 1].astype(jnp.float32)          # (R, 128)
    t = targets_ref[0].astype(jnp.int32)               # (R, 128)

    mask = t != IGNORE_INDEX
    maskf = mask.astype(jnp.float32)
    tm = jnp.logical_and(mask, t == 1).astype(jnp.float32)   # targets * mask

    # ---- cross entropy, specialized for 2 classes (ignore_index aware) ------
    d = jnp.abs(x0 - x1)
    lse = jnp.maximum(x0, x1) + jnp.log(1.0 + jnp.exp(-d))   # logsumexp(x0, x1)
    logit_t = jnp.where(t == 1, x1, x0)
    nll = (lse - logit_t) * maskf

    # ---- dice pieces (channel 1 only, i.e. inputs[:, 1:] with C == 2) -------
    p1 = jax.nn.sigmoid(x1) * maskf

    rows = nll.shape[0]

    def fold(v):
        # (R, 128) -> (8, 128): vreg-aligned reshape + leading-axis sum
        # (pure VPU adds; no cross-lane XLU reduction in the steady state).
        return v.reshape(rows // 8, 8, LANE).sum(axis=0)

    part_ref[0, 0, 0, :, :] = fold(nll)        # ce numerator
    part_ref[0, 0, 1, :, :] = fold(maskf)      # number of valid pixels
    part_ref[0, 0, 2, :, :] = fold(p1 * tm)    # dice intersection
    part_ref[0, 0, 3, :, :] = fold(p1)         # sum(sigmoid(x1) * mask)
    part_ref[0, 0, 4, :, :] = fold(tm)         # sum(targets * mask)


@jax.jit
def dice_cross_entropy_loss(inputs, targets):
    """inputs: (N, 2, H, W) float logits; targets: (N, H, W) int class ids."""
    N, C, H, W = inputs.shape
    assert C == 2, "dice term requires C == 2 (as implied by the PyTorch module)"
    if inputs.dtype not in (jnp.float32, jnp.bfloat16):
        inputs = inputs.astype(jnp.float32)

    HW = H * W
    rows = pl.cdiv(HW, LANE)
    block_rows, rows_padded = _pick_block_rows(rows)
    hw_padded = rows_padded * LANE
    pad = hw_padded - HW

    x = inputs.reshape(N, C, HW)
    t = targets.reshape(N, HW).astype(jnp.uint8)       # 0/1 and 255 all fit in u8
    if pad:
        x = jnp.pad(x, ((0, 0), (0, 0), (0, pad)))
        t = jnp.pad(t, ((0, 0), (0, pad)), constant_values=IGNORE_INDEX)
    x = x.reshape(N, C, rows_padded, LANE)
    t = t.reshape(N, rows_padded, LANE)

    num_blocks = rows_padded // block_rows

    partials = pl.pallas_call(
        _dice_ce_partials_kernel,
        out_shape=jax.ShapeDtypeStruct((N, num_blocks, 5, 8, LANE), jnp.float32),
        grid_spec=pltpu.PrefetchScalarGridSpec(
            num_scalar_prefetch=0,
            grid=(N, num_blocks),
            in_specs=[
                pl.BlockSpec((1, C, block_rows, LANE), lambda n, r: (n, 0, r, 0)),
                pl.BlockSpec((1, block_rows, LANE), lambda n, r: (n, r, 0)),
            ],
            out_specs=pl.BlockSpec((1, 1, 5, 8, LANE),
                                   lambda n, r: (n, r, 0, 0, 0)),
        ),
        compiler_params=pltpu.CompilerParams(
            dimension_semantics=("parallel", "parallel")),
    )(x, t)

    # Tiny scalar epilogue in JAX: combine per-block partial sums.
    sums = jnp.sum(partials, axis=(0, 1, 3, 4))        # (5,)
    ce_sum, n_valid, inter, sum_p, sum_t = (sums[i] for i in range(5))
    ce = ce_sum / n_valid if SIZE_AVERAGE else ce_sum  # NaN if all ignored (PyTorch too)
    dice = 1.0 - (2.0 * inter + SMOOTH) / (sum_p + sum_t + SMOOTH)
    return ce + DICE_WEIGHT * dice


def _reference(inputs, targets):
    """Pure-JAX reference mirroring the PyTorch forward."""
    logits = inputs.astype(jnp.float32)
    mask = targets != IGNORE_INDEX
    t_safe = jnp.where(mask, targets, 0)
    logp = jax.nn.log_softmax(logits, axis=1)
    logp_t = jnp.take_along_axis(logp, t_safe[:, None, :, :], axis=1)[:, 0]
    ce = jnp.sum(-logp_t * mask) / jnp.sum(mask)
    p = jax.nn.sigmoid(logits) * mask[:, None, :, :]
    tm = t_safe.astype(jnp.float32)
    pf = p[:, 1:, :, :].reshape(-1)
    tf = tm.reshape(-1)
    inter = jnp.sum(pf * tf)
    dice = 1.0 - (2.0 * inter + SMOOTH) / (jnp.sum(pf) + jnp.sum(tf) + SMOOTH)
    return ce + DICE_WEIGHT * dice


if __name__ == "__main__":
    key = jax.random.PRNGKey(0)
    k1, k2, k3 = jax.random.split(key, 3)
    N, C, H, W = 2, 2, 16, 16

    x = jax.random.normal(k1, (N, C, H, W), dtype=jnp.float32)
    t = jax.random.randint(k2, (N, H, W), 0, C).astype(jnp.int32)
    ignore = jax.random.bernoulli(k3, 0.1, (N, H, W))
    t = jnp.where(ignore, IGNORE_INDEX, t).astype(jnp.int32)

    out = jax.block_until_ready(dice_cross_entropy_loss(x, t))
    ref = _reference(x, t)
    assert jnp.allclose(out, ref, rtol=1e-4, atol=1e-4), (out, ref)

    # Non-multiple-of-128 spatial size exercises the IGNORE_INDEX padding path.
    k4, k5 = jax.random.split(k3)
    H2, W2 = 9, 13
    x2 = jax.random.normal(k4, (N, C, H2, W2), dtype=jnp.float32)
    t2 = jax.random.randint(k5, (N, H2, W2), 0, C).astype(jnp.int32)
    out2 = jax.block_until_ready(dice_cross_entropy_loss(x2, t2))
    ref2 = _reference(x2, t2)
    assert jnp.allclose(out2, ref2, rtol=1e-4, atol=1e-4), (out2, ref2)

    print("KERNEL_OK")
</pallas_src>

<mosaic_0001>
module attributes {stable_mosaic.version = 11 : i64} {
  func.func @_dice_ce_partials_kernel(%arg0: i32, %arg1: i32, %arg2: memref<1x2x32x128xf32, #tpu.memory_space<vmem>>, %arg3: memref<1x32x128xi8, #tpu.memory_space<vmem>>, %arg4: memref<1x1x5x8x128xf32, #tpu.memory_space<vmem>>) attributes {dimension_semantics = [#tpu.dimension_semantics<parallel>, #tpu.dimension_semantics<parallel>], iteration_bounds = array<i64: 2, 1>, scalar_prefetch = 0 : i64, scratch_operands = 0 : i64, tpu.core_type = #tpu.core_type<tc>, window_params = [{transform_indices = @transform_0, window_bounds = array<i64: 1, 2, 32, 128>}, {transform_indices = @transform_1, window_bounds = array<i64: 1, 32, 128>}, {transform_indices = @transform_2, window_bounds = array<i64: 1, 1, 5, 8, 128>}]} {
    %c0 = arith.constant 0 : index
    %c0_0 = arith.constant 0 : index
    %c0_1 = arith.constant 0 : index
    %c0_2 = arith.constant 0 : index
    %0 = vector.load %arg2[%c0, %c0_0, %c0_1, %c0_2] : memref<1x2x32x128xf32, #tpu.memory_space<vmem>>, vector<1x1x32x128xf32>
    %1 = vector.shape_cast %0 : vector<1x1x32x128xf32> to vector<32x128xf32>
    %c0_3 = arith.constant 0 : index
    %c1 = arith.constant 1 : index
    %c0_4 = arith.constant 0 : index
    %c0_5 = arith.constant 0 : index
    %2 = vector.load %arg2[%c0_3, %c1, %c0_4, %c0_5] : memref<1x2x32x128xf32, #tpu.memory_space<vmem>>, vector<1x1x32x128xf32>
    %3 = vector.shape_cast %2 : vector<1x1x32x128xf32> to vector<32x128xf32>
    %c0_6 = arith.constant 0 : index
    %c0_7 = arith.constant 0 : index
    %c0_8 = arith.constant 0 : index
    %4 = vector.load %arg3[%c0_6, %c0_7, %c0_8] : memref<1x32x128xi8, #tpu.memory_space<vmem>>, vector<1x32x128xi8>
    %5 = vector.shape_cast %4 : vector<1x32x128xi8> to vector<32x128xi8>
    %6 = arith.extui %5 : vector<32x128xi8> to vector<32x128xi32>
    %c255_i32 = arith.constant 255 : i32
    %7 = vector.broadcast %c255_i32 : i32 to vector<32x128xi32>
    %8 = arith.cmpi ne, %6, %7 : vector<32x128xi32>
    %9 = arith.extui %8 : vector<32x128xi1> to vector<32x128xi32>
    %10 = arith.sitofp %9 : vector<32x128xi32> to vector<32x128xf32>
    %c1_i32 = arith.constant 1 : i32
    %11 = vector.broadcast %c1_i32 : i32 to vector<32x128xi32>
    %12 = arith.cmpi eq, %6, %11 : vector<32x128xi32>
    %13 = arith.andi %8, %12 : vector<32x128xi1>
    %14 = arith.extui %13 : vector<32x128xi1> to vector<32x128xi32>
    %15 = arith.sitofp %14 : vector<32x128xi32> to vector<32x128xf32>
    %16 = arith.subf %1, %3 : vector<32x128xf32>
    %17 = math.absf %16 : vector<32x128xf32>
    %18 = arith.maximumf %1, %3 : vector<32x128xf32>
    %cst = arith.constant 0.000000e+00 : f32
    %19 = vector.broadcast %cst : f32 to vector<32x128xf32>
    %20 = arith.subf %19, %17 : vector<32x128xf32>
    %21 = math.exp %20 : vector<32x128xf32>
    %cst_9 = arith.constant 1.000000e+00 : f32
    %22 = vector.broadcast %cst_9 : f32 to vector<32x128xf32>
    %23 = arith.addf %22, %21 : vector<32x128xf32>
    %24 = math.log %23 : vector<32x128xf32>
    %25 = arith.addf %18, %24 : vector<32x128xf32>
    %c1_i32_10 = arith.constant 1 : i32
    %26 = vector.broadcast %c1_i32_10 : i32 to vector<32x128xi32>
    %27 = arith.cmpi eq, %6, %26 : vector<32x128xi32>
    %28 = arith.select %27, %3, %1 : vector<32x128xi1>, vector<32x128xf32>
    %29 = arith.subf %25, %28 : vector<32x128xf32>
    %30 = arith.mulf %29, %10 : vector<32x128xf32>
    %31 = arith.negf %3 : vector<32x128xf32>
    %32 = math.exp %31 : vector<32x128xf32>
    %cst_11 = arith.constant 1.000000e+00 : f32
    %33 = vector.broadcast %cst_11 : f32 to vector<32x128xf32>
    %34 = arith.addf %33, %32 : vector<32x128xf32>
    %35 = arith.divf %33, %34 : vector<32x128xf32>
    %36 = arith.mulf %35, %10 : vector<32x128xf32>
    %37 = vector.shape_cast %30 : vector<32x128xf32> to vector<4x8x128xf32>
    %cst_12 = arith.constant dense<0.000000e+00> : vector<8x128xf32>
    %38 = vector.multi_reduction <add>, %37, %cst_12 [0] : vector<4x8x128xf32> to vector<8x128xf32>
    %c0_13 = arith.constant 0 : index
    %c0_14 = arith.constant 0 : index
    %c0_15 = arith.constant 0 : index
    %c0_16 = arith.constant 0 : index
    %c0_17 = arith.constant 0 : index
    %39 = vector.load %arg4[%c0_13, %c0_14, %c0_15, %c0_16, %c0_17] : memref<1x1x5x8x128xf32, #tpu.memory_space<vmem>>, vector<1x1x1x8x128xf32>
    %40 = vector.shape_cast %39 : vector<1x1x1x8x128xf32> to vector<8x128xf32>
    %41 = vector.shape_cast %38 : vector<8x128xf32> to vector<1x1x1x8x128xf32>
    tpu.vector_store %arg4[%c0_13, %c0_14, %c0_15, %c0_16, %c0_17], %41 {strides = array<i32>} : memref<1x1x5x8x128xf32, #tpu.memory_space<vmem>>, vector<1x1x1x8x128xf32>,
    %42 = vector.shape_cast %10 : vector<32x128xf32> to vector<4x8x128xf32>
    %cst_18 = arith.constant dense<0.000000e+00> : vector<8x128xf32>
    %43 = vector.multi_reduction <add>, %42, %cst_18 [0] : vector<4x8x128xf32> to vector<8x128xf32>
    %c0_19 = arith.constant 0 : index
    %c0_20 = arith.constant 0 : index
    %c1_21 = arith.constant 1 : index
    %c0_22 = arith.constant 0 : index
    %c0_23 = arith.constant 0 : index
    %44 = vector.load %arg4[%c0_19, %c0_20, %c1_21, %c0_22, %c0_23] : memref<1x1x5x8x128xf32, #tpu.memory_space<vmem>>, vector<1x1x1x8x128xf32>
    %45 = vector.shape_cast %44 : vector<1x1x1x8x128xf32> to vector<8x128xf32>
    %46 = vector.shape_cast %43 : vector<8x128xf32> to vector<1x1x1x8x128xf32>
    tpu.vector_store %arg4[%c0_19, %c0_20, %c1_21, %c0_22, %c0_23], %46 {strides = array<i32>} : memref<1x1x5x8x128xf32, #tpu.memory_space<vmem>>, vector<1x1x1x8x128xf32>,
    %47 = arith.mulf %36, %15 : vector<32x128xf32>
    %48 = vector.shape_cast %47 : vector<32x128xf32> to vector<4x8x128xf32>
    %cst_24 = arith.constant dense<0.000000e+00> : vector<8x128xf32>
    %49 = vector.multi_reduction <add>, %48, %cst_24 [0] : vector<4x8x128xf32> to vector<8x128xf32>
    %c0_25 = arith.constant 0 : index
    %c0_26 = arith.constant 0 : index
    %c2 = arith.constant 2 : index
    %c0_27 = arith.constant 0 : index
    %c0_28 = arith.constant 0 : index
    %50 = vector.load %arg4[%c0_25, %c0_26, %c2, %c0_27, %c0_28] : memref<1x1x5x8x128xf32, #tpu.memory_space<vmem>>, vector<1x1x1x8x128xf32>
    %51 = vector.shape_cast %50 : vector<1x1x1x8x128xf32> to vector<8x128xf32>
    %52 = vector.shape_cast %49 : vector<8x128xf32> to vector<1x1x1x8x128xf32>
    tpu.vector_store %arg4[%c0_25, %c0_26, %c2, %c0_27, %c0_28], %52 {strides = array<i32>} : memref<1x1x5x8x128xf32, #tpu.memory_space<vmem>>, vector<1x1x1x8x128xf32>,
    %53 = vector.shape_cast %36 : vector<32x128xf32> to vector<4x8x128xf32>
    %cst_29 = arith.constant dense<0.000000e+00> : vector<8x128xf32>
    %54 = vector.multi_reduction <add>, %53, %cst_29 [0] : vector<4x8x128xf32> to vector<8x128xf32>
    %c0_30 = arith.constant 0 : index
    %c0_31 = arith.constant 0 : index
    %c3 = arith.constant 3 : index
    %c0_32 = arith.constant 0 : index
    %c0_33 = arith.constant 0 : index
    %55 = vector.load %arg4[%c0_30, %c0_31, %c3, %c0_32, %c0_33] : memref<1x1x5x8x128xf32, #tpu.memory_space<vmem>>, vector<1x1x1x8x128xf32>
    %56 = vector.shape_cast %55 : vector<1x1x1x8x128xf32> to vector<8x128xf32>
    %57 = vector.shape_cast %54 : vector<8x128xf32> to vector<1x1x1x8x128xf32>
    tpu.vector_store %arg4[%c0_30, %c0_31, %c3, %c0_32, %c0_33], %57 {strides = array<i32>} : memref<1x1x5x8x128xf32, #tpu.memory_space<vmem>>, vector<1x1x1x8x128xf32>,
    %58 = vector.shape_cast %15 : vector<32x128xf32> to vector<4x8x128xf32>
    %cst_34 = arith.constant dense<0.000000e+00> : vector<8x128xf32>
    %59 = vector.multi_reduction <add>, %58, %cst_34 [0] : vector<4x8x128xf32> to vector<8x128xf32>
    %c0_35 = arith.constant 0 : index
    %c0_36 = arith.constant 0 : index
    %c4 = arith.constant 4 : index
    %c0_37 = arith.constant 0 : index
    %c0_38 = arith.constant 0 : index
    %60 = vector.load %arg4[%c0_35, %c0_36, %c4, %c0_37, %c0_38] : memref<1x1x5x8x128xf32, #tpu.memory_space<vmem>>, vector<1x1x1x8x128xf32>
    %61 = vector.shape_cast %60 : vector<1x1x1x8x128xf32> to vector<8x128xf32>
    %62 = vector.shape_cast %59 : vector<8x128xf32> to vector<1x1x1x8x128xf32>
    tpu.vector_store %arg4[%c0_35, %c0_36, %c4, %c0_37, %c0_38], %62 {strides = array<i32>} : memref<1x1x5x8x128xf32, #tpu.memory_space<vmem>>, vector<1x1x1x8x128xf32>,
    return
  }
  func.func @transform_0(%arg0: i32, %arg1: i32) -> (i32, i32, i32, i32) {
    %c0_i32 = arith.constant 0 : i32
    %c0_i32_0 = arith.constant 0 : i32
    %c0_i32_1 = arith.constant 0 : i32
    return %arg0, %c0_i32, %arg1, %c0_i32_0 : i32, i32, i32, i32
  }
  func.func @transform_1(%arg0: i32, %arg1: i32) -> (i32, i32, i32) {
    %c0_i32 = arith.constant 0 : i32
    %c0_i32_0 = arith.constant 0 : i32
    return %arg0, %arg1, %c0_i32 : i32, i32, i32
  }
  func.func @transform_2(%arg0: i32, %arg1: i32) -> (i32, i32, i32, i32, i32) {
    %c0_i32 = arith.constant 0 : i32
    %c0_i32_0 = arith.constant 0 : i32
    %c0_i32_1 = arith.constant 0 : i32
    %c0_i32_2 = arith.constant 0 : i32
    return %arg0, %arg1, %c0_i32, %c0_i32_0, %c0_i32_1 : i32, i32, i32, i32, i32
  }
}

</mosaic_0001>

<bundles_post_ra>
// kernel: dice_cross_entropy_loss.1
= control target key start
LH: loop header
LB: loop body
LE: loop exit
PB: predicated region body
PF: predicated region fallthrough
CT: control target
= control target key end

     0   :  { %s598_s9 = smov 0   ;;  %s600_s10 = smov 0   ;;  %s780_s0 = inlined_call_operand.vmem [shape: f32[2,2,32,128], index: 0, kind: input, shape index: {}]   ;;  %s781_s1 = inlined_call_operand.vmem [shape: u8[2,32,128], index: 1, kind: input, shape index: {}]   ;;  %s782_s2 = inlined_call_operand.vmem [shape: f32[2,1,5,8,128], index: 2, kind: output, shape index: {}]  }
   0x1   :  { %s602_s11 = smov 0  }
   0x2 LB: > { %s24_s12 = sadd.s32 1, %s576_s10  ;;  %p472_p0 = scmp.ge.s32.totalorder %s580_s11, 1  ;;  %s580_s11 = sphi %s602_s11, %s12_s11   ;;  %s576_s10 = sphi %s600_s10, %s786_s10   ;;  %s572_s9 = sphi %s598_s9, %s785_s9  }
   0x3   : > { %p26_p1 = scmp.ge.s32.totalorder %s24_s12, 2  ;;  %p147_p2 = scmp.lt.s32.totalorder %s580_s11, 3 }
   0x5   : > { %s788_s12 = smov (%p26_p1, %s24_s12), 0  ;;  %p148_p3 = pnand %p472_p0, %p147_p2 }
   0x6   : > { %p185_p4 = scmp.lt.s32.totalorder (!%p148_p3), %s572_s9, 1  ;;  %v582_v29 = vmov (!%p148_p3), 0.0  }
   0x7   : > { %151 = sbr.rel (%p148_p3) target bundleno = 68 (0x44), region = 28 }
   0xe   : > { %s790_s9 = smov (!%p185_p4, %s572_s9), 1 }
   0xf   : > { %s499_s13 = sshll.u32 %s790_s9, 6  ;;  %s475_s14 = sshll.u32 %s790_s9, 3 }
  0x10   : > { %s192_s17 = scalar_lea.vmem %s780_s0, %s499_s13  ;;  %s200_s20 = scalar_lea.vmem %s781_s1, %s475_s14 }
  0x11   : > { %v626_v0 = vld [vmem:[%s192_s17] sm:$0xff]  ;;  %v628_v1 = vld [vmem:[%s192_s17 + $0x8] sm:$0xff]  ;;  %v630_v2 = vld [vmem:[%s192_s17 + $0x10] sm:$0xff]  ;;  %s500_s21 = smul.u32 40, %s790_s9 }
  0x12   : > { %v632_v3 = vld [vmem:[%s192_s17 + $0x18] sm:$0xff]  ;;  %v634_v4 = vld [vmem:[%s192_s17 + $0x20] sm:$0xff]  ;;  %v636_v5 = vld [vmem:[%s192_s17 + $0x28] sm:$0xff] }
  0x13   : > { %v638_v6 = vld [vmem:[%s192_s17 + $0x30] sm:$0xff]  ;;  %v640_v7 = vld [vmem:[%s192_s17 + $0x38] sm:$0xff]  ;;  %v219_v8 = vld [vmem:[%s200_s20] sm:$0xff]  ;;  %v256_v9 = vsub.f32 %v626_v0, %v634_v4  ;;  %v257_v10 = vsub.f32 %v628_v1, %v636_v5  ;;  %v489_v40 = vmul.f32 -1.442695, %v634_v4  ;;  %s706_s24 = scalar_lea.vmem %s782_s2, %s500_s21 }
  0x14   : > { %v220_v11 = vunpack.c.0.s8 %v219_v8  ;;  %v221_v12 = vunpack.c.1.s8 %v219_v8  ;;  %v222_v13 = vunpack.c.2.s8 %v219_v8  ;;  %v223_v14 = vunpack.c.3.s8 %v219_v8 }
  0x15   : > { %v258_v15 = vsub.f32 %v630_v2, %v638_v6  ;;  %v259_v16 = vsub.f32 %v632_v3, %v640_v7  ;;  %v260_v20 = vand.u32 2147483647, %v256_v9  ;;  %v261_v21 = vand.u32 2147483647, %v257_v10 }
  0x16   : > { %v650_v17 = vand.u32 255, %v220_v11  ;;  %v652_v18 = vand.u32 255, %v221_v12  ;;  %v654_v19 = vand.u32 255, %v222_v13  ;;  %v656_v24 = vand.u32 255, %v223_v14 }
  0x17   : > { %v262_v22 = vand.u32 2147483647, %v258_v15  ;;  %v263_v23 = vand.u32 2147483647, %v259_v16  ;;  %v268_v25 = vsub.f32 0.0, %v260_v20  ;;  %v269_v26 = vsub.f32 0.0, %v261_v21 }
  0x18   : > { %vm228_vm0 = vcmp.ne.s32.totalorder %v650_v17, 255  ;;  %vm229_vm1 = vcmp.ne.s32.totalorder %v652_v18, 255  ;;  %vm230_vm2 = vcmp.ne.s32.totalorder %v654_v19, 255  ;;  %vm240_vm3 = vcmp.eq.s32.totalorder %v650_v17, 1 }
  0x19   : > { %vm241_vm4 = vcmp.eq.s32.totalorder %v652_v18, 1  ;;  %v270_v27 = vsub.f32 0.0, %v262_v22  ;;  %v271_v28 = vsub.f32 0.0, %v263_v23  ;;  %vm231_vm5 = vcmp.ne.s32.totalorder %v656_v24, 255  ;;  %vm678_vm7 = vmand %vm228_vm0, %vm240_vm3 }
  0x1a   : > { %v667_v30 = vsel %vm228_vm0, 1.0, %v582_v29  ;;  %v671_v31 = vsel %vm229_vm1, 1.0, %v582_v29  ;;  %vm242_vm6 = vcmp.eq.s32.totalorder %v654_v19, 1  ;;  %v272_v33 = vmul.f32 1.442695, %v268_v25  ;;  %vm245_vm8 = vmand %vm229_vm1, %vm241_vm4 }
  0x1b   : > { %v274_v34 = vmul.f32 1.442695, %v269_v26  ;;  %v276_v35 = vmul.f32 1.442695, %v270_v27  ;;  %v340_v36 = vadd.f32 %v671_v31, %v667_v30  ;;  %v690_v37 = vsel %vm230_vm2, 1.0, %v582_v29  ;;  %vm246_vm10 = vmand %vm230_vm2, %vm242_vm6 }
  0x1c   : > { %vm243_vm9 = vcmp.eq.s32.totalorder %v656_v24, 1  ;;  %v278_v38 = vmul.f32 1.442695, %v271_v28  ;;  %v695_v39 = vsel %vm231_vm5, 1.0, %v582_v29  ;;  %526 = vpow2.f32 %v272_v33 }
  0x1d   : > { %v341_v41 = vadd.f32 %v690_v37, %v340_v36  ;;  %528 = vpow2.f32 %v274_v34  ;;  %v490_v42 = vmul.f32 -1.442695, %v636_v5  ;;  %v711_v43 = vsel %vm678_vm7, 1.0, %v582_v29  ;;  %vm247_vm11 = vmand %vm231_vm5, %vm243_vm9 }
  0x1e   : > { %v713_v44 = vsel %vm245_vm8, 1.0, %v582_v29  ;;  %530 = vpow2.f32 %v276_v35  ;;  %v491_v45 = vmul.f32 -1.442695, %v638_v6  ;;  %v492_v48 = vmul.f32 -1.442695, %v640_v7 }
  0x1f   : > { %v342_v46 = vadd.f32 %v695_v39, %v341_v41  ;;  %v359_v47 = vadd.f32 %v713_v44, %v711_v43  ;;  %532 = vpow2.f32 %v278_v38  ;;  %v724_v49 = vsel %vm246_vm10, 1.0, %v582_v29 }
  0x20   : > { %534 = vpow2.f32 %v489_v40  ;;  %v728_v51 = vsel %vm247_vm11, 1.0, %v582_v29  ;;  %v264_v13 = vmax.f32 %v626_v0, %v634_v4  ;;  %v265_v15 = vmax.f32 %v628_v1, %v636_v5 }
  0x21   : > { %493 = vst [vmem:[%s706_s24 + $0x8] sm:$0xff] %v342_v46  ;;  %v360_v50 = vadd.f32 %v724_v49, %v359_v47  ;;  %536 = vpow2.f32 %v490_v42  ;;  %v266_v20 = vmax.f32 %v630_v2, %v638_v6  ;;  %v267_v23 = vmax.f32 %v632_v3, %v640_v7 }
  0x22   : > { %538 = vpow2.f32 %v491_v45  ;;  %v296_v26 = vsel %vm240_vm3, %v634_v4, %v626_v0  ;;  %v297_v32 = vsel %vm241_vm4, %v636_v5, %v628_v1  ;;  %v298_v36 = vsel %vm242_vm6, %v638_v6, %v630_v2 }
  0x23   : > { %v361_v52 = vadd.f32 %v728_v51, %v360_v50  ;;  %540 = vpow2.f32 %v492_v48  ;;  %v299_v0 = vsel %vm243_vm9, %v640_v7, %v632_v3 }
  0x25   : > { %496 = vst [vmem:[%s706_s24 + $0x20] sm:$0xff] %v361_v52 }
  0x26   : > { %v527_v53 = vpop.eup %526 }
  0x27   : > { %v529_v54 = vpop.eup %528  ;;  %v280_v55 = vadd.f32 1.0, %v527_v53 }
  0x28   : > { %v531_v56 = vpop.eup %530  ;;  %v281_v57 = vadd.f32 1.0, %v529_v54 }
  0x29   : > { %v533_v58 = vpop.eup %532  ;;  %v282_v59 = vadd.f32 1.0, %v531_v56  ;;  %542 = vlog2.f32 %v280_v55 }
  0x2a   : > { %v535_v60 = vpop.eup %534  ;;  %v283_v61 = vadd.f32 1.0, %v533_v58  ;;  %544 = vlog2.f32 %v281_v57 }
  0x2b   : > { %v537_v62 = vpop.eup %536  ;;  %546 = vlog2.f32 %v282_v59  ;;  %v320_v63 = vadd.f32 1.0, %v535_v60 }
  0x2c   : > { %v539_v8 = vpop.eup %538  ;;  %548 = vlog2.f32 %v283_v61  ;;  %v321_v9 = vadd.f32 1.0, %v537_v62 }
  0x2d   : > { %v541_v10 = vpop.eup %540  ;;  %v322_v11 = vadd.f32 1.0, %v539_v8  ;;  %550 = vrcp.f32 %v320_v63 }
  0x2e   : > { %v323_v12 = vadd.f32 1.0, %v541_v10  ;;  %552 = vrcp.f32 %v321_v9 }
  0x2f   : > { %554 = vrcp.f32 %v322_v11 }
  0x30   : > { %556 = vrcp.f32 %v323_v12 }
  0x33   : > { %v543_v14 = vpop.eup %542 }
  0x34   : > { %v545_v16 = vpop.eup %544  ;;  %v285_v21 = vmul.f32 0.6931472, %v543_v14 }
  0x35   : > { %v547_v22 = vpop.eup %546  ;;  %v287_v25 = vmul.f32 0.6931472, %v545_v16 }
  0x36   : > { %v549_v27 = vpop.eup %548  ;;  %v289_v28 = vmul.f32 0.6931472, %v547_v22  ;;  %v292_v29 = vadd.f32 %v285_v21, %v264_v13 }
  0x37   : > { %v551_v33 = vpop.eup %550  ;;  %v291_v34 = vmul.f32 0.6931472, %v549_v27  ;;  %v293_v35 = vadd.f32 %v287_v25, %v265_v15 }
  0x38   : > { %v553_v38 = vpop.eup %552  ;;  %v294_v40 = vadd.f32 %v289_v28, %v266_v20  ;;  %v300_v4 = vsub.f32 %v292_v29, %v296_v26  ;;  %v332_v17 = vmul.f32 %v551_v33, %v667_v30 }
  0x39   : > { %v555_v18 = vpop.eup %554  ;;  %v295_v1 = vadd.f32 %v291_v34, %v267_v23  ;;  %v301_v5 = vsub.f32 %v293_v35, %v297_v32  ;;  %v333_v41 = vmul.f32 %v553_v38, %v671_v31 }
  0x3a   : > { %v557_v42 = vpop.eup %556  ;;  %v302_v45 = vsub.f32 %v294_v40, %v298_v36  ;;  %v304_v19 = vmul.f32 %v667_v30, %v300_v4  ;;  %v334_v2 = vmul.f32 %v555_v18, %v690_v37  ;;  %v345_v6 = vmul.f32 %v711_v43, %v332_v17 }
  0x3b   : > { %v303_v46 = vsub.f32 %v295_v1, %v299_v0  ;;  %v305_v24 = vmul.f32 %v671_v31, %v301_v5  ;;  %v335_v3 = vmul.f32 %v557_v42, %v695_v39  ;;  %v346_v7 = vmul.f32 %v713_v44, %v333_v41 }
  0x3c   : > { %v306_v47 = vmul.f32 %v690_v37, %v302_v45  ;;  %v347_v48 = vmul.f32 %v724_v49, %v334_v2  ;;  %v354_v50 = vadd.f32 %v333_v41, %v332_v17 }
  0x3d   : > { %v307_v30 = vmul.f32 %v695_v39, %v303_v46  ;;  %v336_v52 = vadd.f32 %v305_v24, %v304_v19  ;;  %v348_v43 = vmul.f32 %v728_v51, %v335_v3  ;;  %v349_v53 = vadd.f32 %v346_v7, %v345_v6 }
  0x3e   : > { %v355_v54 = vadd.f32 %v354_v50, %v334_v2 }
  0x3f   : > { %v337_v31 = vadd.f32 %v336_v52, %v306_v47  ;;  %v350_v55 = vadd.f32 %v349_v53, %v347_v48 }
  0x40   : > { %v356_v56 = vadd.f32 %v355_v54, %v335_v3 }
  0x41   : > { %v338_v57 = vadd.f32 %v337_v31, %v307_v30  ;;  %v351_v58 = vadd.f32 %v350_v55, %v348_v43 }
  0x42   : > { %495 = vst [vmem:[%s706_s24 + $0x18] sm:$0xff] %v356_v56 }
  0x43   : > { %339 = vst [vmem:[%s706_s24] sm:$0xff] %v338_v57  ;;  %494 = vst [vmem:[%s706_s24 + $0x10] sm:$0xff] %v351_v58 }
  0x44 PF: > { %s12_s11 = sadd.s32 1, %s580_s11   ;;  %s785_s9 = smov %s576_s10 }
  0x45   : > { %p9_p5 = scmp.ge.s32.totalorder %s12_s11, 4   ;;  %s786_s10 = smov %s788_s12 }
  0x47   :  { %11 = sbr.rel (!%p9_p5) target bundleno = 2 (0x2), region = 66 }

</bundles_post_ra>
